<compile_context>
chip_gen: v5e
topology: v5e:2x2
jax: 0.10.0
libtpu: 0.0.40
codegen_flags: <defaults>
</compile_context>

<pallas_src>
import math

import jax
import jax.numpy as jnp
from jax import lax
from jax.experimental import pallas as pl
from jax.experimental.pallas import tpu as pltpu

SR = 60  # kept for parity with the reference module (unused in this config)

LANE = 128


def _round_up(n, m=LANE):
    return ((n + m - 1) // m) * m


def _leaky_relu(x, slope=0.01):
    return jnp.where(x >= 0, x, slope * x)


# --------------------------------------------------------------------------- #
# Kernel: one batch-tile of shape (TB, T, ·) per grid step.
# --------------------------------------------------------------------------- #
def modular_kernel(x_ref, s0_ref,
                   wa1_ref, ba1_ref, wa2_ref, ba2_ref,
                   wm1_ref, bm1_ref, wm2_ref, bm2_ref,
                   wj1_ref, bj1_ref, wj2_ref, bj2_ref,
                   out_ref):
    f32, bf16 = jnp.float32, jnp.bfloat16
    TB, T, Din = x_ref.shape
    O = out_ref.shape[-1]
    OP = wj2_ref.shape[-1]

    def dense(v, w_ref, b_ref):
        # bf16 matmul inputs (MXU-native on v5e/v6e/v7x), f32 accumulation;
        # bias add and every following elementwise op stay f32 (v5e has no bf16 VPU/EUP).
        return jnp.dot(v.astype(bf16), w_ref[...],
                       preferred_element_type=f32) + b_ref[...]

    x = x_ref[...].reshape(TB * T, Din)                      # (M, Din) f32

    # activation_model: Linear -> LeakyReLU -> Dropout(id) -> Linear, then sigmoid.
    h = _leaky_relu(dense(x, wa1_ref, ba1_ref))
    a = jax.nn.sigmoid(dense(h, wa2_ref, ba2_ref))           # padded lanes hold 0.5 ...
    # muscle_model (wm1's padded ROWS are exactly zero, so the 0.5's above cancel).
    h = _leaky_relu(dense(a, wm1_ref, bm1_ref))
    m = dense(h, wm2_ref, bm2_ref)                           # padded lanes == 0
    # joint_model: per-step update u.
    h = _leaky_relu(dense(m, wj1_ref, bj1_ref))
    u = dense(h, wj2_ref, bj2_ref)                           # (M, OP); padded lanes == 0

    # Stateful accumulation over time, per batch element:
    #   s[b, t] = s0[b] + sum_{t' <= t} u[b, t']
    # Hillis-Steele inclusive prefix scan: ceil(log2(T)) shift-and-add steps,
    # elementwise-only (no (T,T) triangular operand, no broadcast_to, no batched
    # mini-matmuls on the MXU).
    s = u.reshape(TB, T, OP)
    shift = 1
    while shift < T:
        shifted = jnp.concatenate(
            [jnp.zeros((TB, shift, OP), f32), s[:, :T - shift, :]], axis=1)
        s = s + shifted
        shift *= 2

    # Narrow (lane-masked) store: O real lanes instead of 128 zero-padded ones.
    out_ref[...] = s[:, :, :O] + s0_ref[...]                 # s0: (TB, 1, O)


# --------------------------------------------------------------------------- #
# Wrapper
# --------------------------------------------------------------------------- #
def _pad2(a, rows, cols):
    out = jnp.zeros((rows, cols), a.dtype)
    return out.at[: a.shape[0], : a.shape[1]].set(a)


def modular_forward(x, s0, p):
    """x: (B, T, input_size) f32, s0: (B, 1, output_size) f32 -> (B, T, output_size)."""
    B, T, Din = x.shape
    H = p["wa1"].shape[1]
    O = p["wj2"].shape[1]
    HP, O2P, O4P, OP = _round_up(H), _round_up(2 * O), _round_up(4 * O), _round_up(O)

    # Rows-per-tile target ~2048 (amortizes ~0.35us/grid-step overhead, fits easily in
    # v7x's 64 MiB VMEM). Cap TB at ceil(B/2) so the grid has >= 2 steps and both v7x
    # TensorCores get work under the "parallel" dimension semantics.
    ROWS_PER_TILE = 2048
    TB = max(1, min(max(1, ROWS_PER_TILE // T), -(-B // 2)))
    nb = pl.cdiv(B, TB)
    B_pad = nb * TB

    xf = x.astype(jnp.float32)
    s0f = s0.reshape(B, 1, O).astype(jnp.float32)
    if B_pad != B:  # pad batch only; B_pad - B < TB, garbage rows are sliced off below.
        xf = jnp.zeros((B_pad, T, Din), jnp.float32).at[:B].set(xf)
        s0f = jnp.zeros((B_pad, 1, O), jnp.float32).at[:B].set(s0f)

    bf16 = jnp.bfloat16
    # Weights: zero-padded to lane-aligned widths, cast to bf16 (MXU-native rate; the
    # kernel accumulates in f32).  Biases stay f32 (VPU adds).
    # INVARIANT: padded rows/cols must be exactly zero — in particular wm1's padded ROWS
    # cancel the sigmoid(0)=0.5 values in the padded lanes of `a`.  bf16(0) == 0, so the
    # cast preserves this.
    pp = [
        _pad2(p["wa1"], Din, HP).astype(bf16), _pad2(p["ba1"], 1, HP),
        _pad2(p["wa2"], HP, O2P).astype(bf16), _pad2(p["ba2"], 1, O2P),
        _pad2(p["wm1"], O2P, HP).astype(bf16), _pad2(p["bm1"], 1, HP),
        _pad2(p["wm2"], HP, O4P).astype(bf16), _pad2(p["bm2"], 1, O4P),
        _pad2(p["wj1"], O4P, HP).astype(bf16), _pad2(p["bj1"], 1, HP),
        _pad2(p["wj2"], HP, OP).astype(bf16),  _pad2(p["bj2"], 1, OP),
    ]

    def resident(a):  # whole array resident in VMEM, constant index_map
        nd = a.ndim
        return pl.BlockSpec(a.shape, lambda i, _nd=nd: (0,) * _nd)

    in_specs = ([pl.BlockSpec((TB, T, Din), lambda i: (i, 0, 0)),   # x: real feature width
                 pl.BlockSpec((TB, 1, O), lambda i: (i, 0, 0))]     # s0: real output width
                + [resident(a) for a in pp])
    out_specs = pl.BlockSpec((TB, T, O), lambda i: (i, 0, 0))       # narrow output block

    # Advisory cost estimate.
    M = B_pad * T
    flops = int(2 * M * (Din * HP + HP * O2P + O2P * HP + HP * O4P + O4P * HP + HP * OP)
                + M * OP * max(1, math.ceil(math.log2(max(T, 2)))))
    transcendentals = int(M * O2P)  # sigmoid
    bytes_accessed = int(4 * (xf.size + s0f.size + B_pad * T * O)
                         + sum(int(a.size) * a.dtype.itemsize for a in pp))

    out = pl.pallas_call(
        modular_kernel,
        out_shape=jax.ShapeDtypeStruct((B_pad, T, O), jnp.float32),
        grid=(nb,),
        in_specs=in_specs,
        out_specs=out_specs,
        compiler_params=pltpu.CompilerParams(
            dimension_semantics=("parallel",),        # batch tiles -> both TCs on v7x
            vmem_limit_bytes=48 * 1024 * 1024,        # headroom under v7x's 64 MiB VMEM
        ),
        cost_estimate=pl.CostEstimate(
            flops=flops, transcendentals=transcendentals, bytes_accessed=bytes_accessed),
    )(xf, s0f, *pp)

    return out[:B]


# --------------------------------------------------------------------------- #
# Params + pure-JAX reference (sequential, matches the PyTorch loop exactly)
# --------------------------------------------------------------------------- #
def init_params(key, input_size, output_size, hidden):
    """Deterministic init; weights stored transposed (in, out) so y = x @ W + b."""
    O = output_size
    shapes = {
        "wa1": (input_size, hidden), "ba1": (1, hidden),
        "wa2": (hidden, 2 * O),      "ba2": (1, 2 * O),
        "wm1": (2 * O, hidden),      "bm1": (1, hidden),
        "wm2": (hidden, 4 * O),      "bm2": (1, 4 * O),
        "wj1": (4 * O, hidden),      "bj1": (1, hidden),
        "wj2": (hidden, O),          "bj2": (1, O),
    }
    keys = jax.random.split(key, len(shapes))
    return {name: 0.1 * jax.random.normal(k, shp, dtype=jnp.float32)
            for (name, shp), k in zip(shapes.items(), keys)}


def reference_forward(x, s0, p):
    B, T, _ = x.shape
    outs = []
    s = s0.astype(jnp.float32)                                           # (B, 1, O)
    for i in range(T):
        xi = x[:, i:i + 1, :]
        h = _leaky_relu(xi @ p["wa1"] + p["ba1"])
        a = jax.nn.sigmoid(h @ p["wa2"] + p["ba2"])
        h = _leaky_relu(a @ p["wm1"] + p["bm1"])
        m = h @ p["wm2"] + p["bm2"]
        h = _leaky_relu(m @ p["wj1"] + p["bj1"])
        u = h @ p["wj2"] + p["bj2"]
        s = s + u
        outs.append(s)
    return jnp.concatenate(outs, axis=1)


if __name__ == "__main__":
    B, T = 2, 8
    input_size, output_size, hidden = 6, 3, 32

    key = jax.random.PRNGKey(0)
    k_x, k_y, k_p = jax.random.split(key, 3)

    x = jax.random.normal(k_x, (B, T, input_size), dtype=jnp.float32)
    # Targets `y` only supply the joint model's starting state: s0 = y[:, 0:1, :]
    y = jax.random.normal(k_y, (B, T, output_size), dtype=jnp.float32)
    s0 = y[:, 0:1, :]

    params = init_params(k_p, input_size, output_size, hidden)

    out = modular_forward(x, s0, params)
    out = jax.block_until_ready(out)

    ref = reference_forward(x, s0, params)
    assert out.shape == (B, T, output_size)
    # bf16 matmul inputs (f32 accumulation) + tree-order prefix sum give ~1e-3 drift
    # vs. the sequential f32 reference; 1e-2 tolerance covers it.
    err = float(jnp.max(jnp.abs(out - ref)))
    assert jnp.allclose(out, ref, atol=1e-2, rtol=1e-2), f"mismatch vs. reference (max abs err {err})"

    print("KERNEL_OK")
</pallas_src>

<mosaic_0001>
module attributes {stable_mosaic.version = 11 : i64} {
  func.func @modular_kernel(%arg0: i32, %arg1: memref<1x8x6xf32, #tpu.memory_space<vmem>>, %arg2: memref<1x1x3xf32, #tpu.memory_space<vmem>>, %arg3: memref<6x128xbf16, #tpu.memory_space<vmem>>, %arg4: memref<1x128xf32, #tpu.memory_space<vmem>>, %arg5: memref<128x128xbf16, #tpu.memory_space<vmem>>, %arg6: memref<1x128xf32, #tpu.memory_space<vmem>>, %arg7: memref<128x128xbf16, #tpu.memory_space<vmem>>, %arg8: memref<1x128xf32, #tpu.memory_space<vmem>>, %arg9: memref<128x128xbf16, #tpu.memory_space<vmem>>, %arg10: memref<1x128xf32, #tpu.memory_space<vmem>>, %arg11: memref<128x128xbf16, #tpu.memory_space<vmem>>, %arg12: memref<1x128xf32, #tpu.memory_space<vmem>>, %arg13: memref<128x128xbf16, #tpu.memory_space<vmem>>, %arg14: memref<1x128xf32, #tpu.memory_space<vmem>>, %arg15: memref<1x8x3xf32, #tpu.memory_space<vmem>>) attributes {dimension_semantics = [#tpu.dimension_semantics<parallel>], iteration_bounds = array<i64: 2>, scalar_prefetch = 0 : i64, scratch_operands = 0 : i64, tpu.core_type = #tpu.core_type<tc>, window_params = [{transform_indices = @transform_0, window_bounds = array<i64: 1, 8, 6>}, {transform_indices = @transform_1, window_bounds = array<i64: 1, 1, 3>}, {pipeline_mode = #tpu.pipeline_mode<synchronous>, transform_indices = @transform_2, window_bounds = array<i64: 6, 128>}, {pipeline_mode = #tpu.pipeline_mode<synchronous>, transform_indices = @transform_3, window_bounds = array<i64: 1, 128>}, {pipeline_mode = #tpu.pipeline_mode<synchronous>, transform_indices = @transform_4, window_bounds = array<i64: 128, 128>}, {pipeline_mode = #tpu.pipeline_mode<synchronous>, transform_indices = @transform_5, window_bounds = array<i64: 1, 128>}, {pipeline_mode = #tpu.pipeline_mode<synchronous>, transform_indices = @transform_6, window_bounds = array<i64: 128, 128>}, {pipeline_mode = #tpu.pipeline_mode<synchronous>, transform_indices = @transform_7, window_bounds = array<i64: 1, 128>}, {pipeline_mode = #tpu.pipeline_mode<synchronous>, transform_indices = @transform_8, window_bounds = array<i64: 128, 128>}, {pipeline_mode = #tpu.pipeline_mode<synchronous>, transform_indices = @transform_9, window_bounds = array<i64: 1, 128>}, {pipeline_mode = #tpu.pipeline_mode<synchronous>, transform_indices = @transform_10, window_bounds = array<i64: 128, 128>}, {pipeline_mode = #tpu.pipeline_mode<synchronous>, transform_indices = @transform_11, window_bounds = array<i64: 1, 128>}, {pipeline_mode = #tpu.pipeline_mode<synchronous>, transform_indices = @transform_12, window_bounds = array<i64: 128, 128>}, {pipeline_mode = #tpu.pipeline_mode<synchronous>, transform_indices = @transform_13, window_bounds = array<i64: 1, 128>}, {transform_indices = @transform_14, window_bounds = array<i64: 1, 8, 3>}]} {
    %c0 = arith.constant 0 : index
    %c0_0 = arith.constant 0 : index
    %c0_1 = arith.constant 0 : index
    %0 = vector.load %arg1[%c0, %c0_0, %c0_1] : memref<1x8x6xf32, #tpu.memory_space<vmem>>, vector<1x8x6xf32>
    %1 = vector.shape_cast %0 : vector<1x8x6xf32> to vector<8x6xf32>
    %2 = arith.truncf %1 : vector<8x6xf32> to vector<8x6xbf16>
    %c0_2 = arith.constant 0 : index
    %c0_3 = arith.constant 0 : index
    %3 = vector.load %arg3[%c0_2, %c0_3] : memref<6x128xbf16, #tpu.memory_space<vmem>>, vector<6x128xbf16>
    %cst = arith.constant dense<0.000000e+00> : vector<8x128xf32>
    %4 = tpu.matmul %2, %3, %cst {dimension_numbers = #tpu.dot_dimension_numbers<[1], [0], [0], [1], [0, 0, 1, 1], [], []>} : vector<8x6xbf16>, vector<6x128xbf16>, vector<8x128xf32> -> vector<8x128xf32>
    %c0_4 = arith.constant 0 : index
    %c0_5 = arith.constant 0 : index
    %5 = vector.load %arg4[%c0_4, %c0_5] : memref<1x128xf32, #tpu.memory_space<vmem>>, vector<1x128xf32>
    %6 = vector.broadcast %5 : vector<1x128xf32> to vector<8x128xf32>
    %7 = arith.addf %4, %6 : vector<8x128xf32>
    %cst_6 = arith.constant 0.000000e+00 : f32
    %8 = vector.broadcast %cst_6 : f32 to vector<8x128xf32>
    %9 = arith.cmpf oge, %7, %8 : vector<8x128xf32>
    %cst_7 = arith.constant 0.00999999977 : f32
    %10 = vector.broadcast %cst_7 : f32 to vector<8x128xf32>
    %11 = arith.mulf %10, %7 : vector<8x128xf32>
    %12 = arith.select %9, %7, %11 : vector<8x128xi1>, vector<8x128xf32>
    %13 = arith.truncf %12 : vector<8x128xf32> to vector<8x128xbf16>
    %c0_8 = arith.constant 0 : index
    %c0_9 = arith.constant 0 : index
    %14 = vector.load %arg5[%c0_8, %c0_9] : memref<128x128xbf16, #tpu.memory_space<vmem>>, vector<128x128xbf16>
    %cst_10 = arith.constant dense<0.000000e+00> : vector<8x128xf32>
    %15 = tpu.matmul %13, %14, %cst_10 {dimension_numbers = #tpu.dot_dimension_numbers<[1], [0], [0], [1], [0, 0, 1, 1], [], []>} : vector<8x128xbf16>, vector<128x128xbf16>, vector<8x128xf32> -> vector<8x128xf32>
    %c0_11 = arith.constant 0 : index
    %c0_12 = arith.constant 0 : index
    %16 = vector.load %arg6[%c0_11, %c0_12] : memref<1x128xf32, #tpu.memory_space<vmem>>, vector<1x128xf32>
    %17 = vector.broadcast %16 : vector<1x128xf32> to vector<8x128xf32>
    %18 = arith.addf %15, %17 : vector<8x128xf32>
    %19 = arith.negf %18 : vector<8x128xf32>
    %20 = math.exp %19 : vector<8x128xf32>
    %cst_13 = arith.constant 1.000000e+00 : f32
    %21 = vector.broadcast %cst_13 : f32 to vector<8x128xf32>
    %22 = arith.addf %21, %20 : vector<8x128xf32>
    %23 = arith.divf %21, %22 : vector<8x128xf32>
    %24 = arith.truncf %23 : vector<8x128xf32> to vector<8x128xbf16>
    %c0_14 = arith.constant 0 : index
    %c0_15 = arith.constant 0 : index
    %25 = vector.load %arg7[%c0_14, %c0_15] : memref<128x128xbf16, #tpu.memory_space<vmem>>, vector<128x128xbf16>
    %cst_16 = arith.constant dense<0.000000e+00> : vector<8x128xf32>
    %26 = tpu.matmul %24, %25, %cst_16 {dimension_numbers = #tpu.dot_dimension_numbers<[1], [0], [0], [1], [0, 0, 1, 1], [], []>} : vector<8x128xbf16>, vector<128x128xbf16>, vector<8x128xf32> -> vector<8x128xf32>
    %c0_17 = arith.constant 0 : index
    %c0_18 = arith.constant 0 : index
    %27 = vector.load %arg8[%c0_17, %c0_18] : memref<1x128xf32, #tpu.memory_space<vmem>>, vector<1x128xf32>
    %28 = vector.broadcast %27 : vector<1x128xf32> to vector<8x128xf32>
    %29 = arith.addf %26, %28 : vector<8x128xf32>
    %cst_19 = arith.constant 0.000000e+00 : f32
    %30 = vector.broadcast %cst_19 : f32 to vector<8x128xf32>
    %31 = arith.cmpf oge, %29, %30 : vector<8x128xf32>
    %cst_20 = arith.constant 0.00999999977 : f32
    %32 = vector.broadcast %cst_20 : f32 to vector<8x128xf32>
    %33 = arith.mulf %32, %29 : vector<8x128xf32>
    %34 = arith.select %31, %29, %33 : vector<8x128xi1>, vector<8x128xf32>
    %35 = arith.truncf %34 : vector<8x128xf32> to vector<8x128xbf16>
    %c0_21 = arith.constant 0 : index
    %c0_22 = arith.constant 0 : index
    %36 = vector.load %arg9[%c0_21, %c0_22] : memref<128x128xbf16, #tpu.memory_space<vmem>>, vector<128x128xbf16>
    %cst_23 = arith.constant dense<0.000000e+00> : vector<8x128xf32>
    %37 = tpu.matmul %35, %36, %cst_23 {dimension_numbers = #tpu.dot_dimension_numbers<[1], [0], [0], [1], [0, 0, 1, 1], [], []>} : vector<8x128xbf16>, vector<128x128xbf16>, vector<8x128xf32> -> vector<8x128xf32>
    %c0_24 = arith.constant 0 : index
    %c0_25 = arith.constant 0 : index
    %38 = vector.load %arg10[%c0_24, %c0_25] : memref<1x128xf32, #tpu.memory_space<vmem>>, vector<1x128xf32>
    %39 = vector.broadcast %38 : vector<1x128xf32> to vector<8x128xf32>
    %40 = arith.addf %37, %39 : vector<8x128xf32>
    %41 = arith.truncf %40 : vector<8x128xf32> to vector<8x128xbf16>
    %c0_26 = arith.constant 0 : index
    %c0_27 = arith.constant 0 : index
    %42 = vector.load %arg11[%c0_26, %c0_27] : memref<128x128xbf16, #tpu.memory_space<vmem>>, vector<128x128xbf16>
    %cst_28 = arith.constant dense<0.000000e+00> : vector<8x128xf32>
    %43 = tpu.matmul %41, %42, %cst_28 {dimension_numbers = #tpu.dot_dimension_numbers<[1], [0], [0], [1], [0, 0, 1, 1], [], []>} : vector<8x128xbf16>, vector<128x128xbf16>, vector<8x128xf32> -> vector<8x128xf32>
    %c0_29 = arith.constant 0 : index
    %c0_30 = arith.constant 0 : index
    %44 = vector.load %arg12[%c0_29, %c0_30] : memref<1x128xf32, #tpu.memory_space<vmem>>, vector<1x128xf32>
    %45 = vector.broadcast %44 : vector<1x128xf32> to vector<8x128xf32>
    %46 = arith.addf %43, %45 : vector<8x128xf32>
    %cst_31 = arith.constant 0.000000e+00 : f32
    %47 = vector.broadcast %cst_31 : f32 to vector<8x128xf32>
    %48 = arith.cmpf oge, %46, %47 : vector<8x128xf32>
    %cst_32 = arith.constant 0.00999999977 : f32
    %49 = vector.broadcast %cst_32 : f32 to vector<8x128xf32>
    %50 = arith.mulf %49, %46 : vector<8x128xf32>
    %51 = arith.select %48, %46, %50 : vector<8x128xi1>, vector<8x128xf32>
    %52 = arith.truncf %51 : vector<8x128xf32> to vector<8x128xbf16>
    %c0_33 = arith.constant 0 : index
    %c0_34 = arith.constant 0 : index
    %53 = vector.load %arg13[%c0_33, %c0_34] : memref<128x128xbf16, #tpu.memory_space<vmem>>, vector<128x128xbf16>
    %cst_35 = arith.constant dense<0.000000e+00> : vector<8x128xf32>
    %54 = tpu.matmul %52, %53, %cst_35 {dimension_numbers = #tpu.dot_dimension_numbers<[1], [0], [0], [1], [0, 0, 1, 1], [], []>} : vector<8x128xbf16>, vector<128x128xbf16>, vector<8x128xf32> -> vector<8x128xf32>
    %c0_36 = arith.constant 0 : index
    %c0_37 = arith.constant 0 : index
    %55 = vector.load %arg14[%c0_36, %c0_37] : memref<1x128xf32, #tpu.memory_space<vmem>>, vector<1x128xf32>
    %56 = vector.broadcast %55 : vector<1x128xf32> to vector<8x128xf32>
    %57 = arith.addf %54, %56 : vector<8x128xf32>
    %58 = vector.shape_cast %57 : vector<8x128xf32> to vector<1x8x128xf32>
    %cst_38 = arith.constant 0.000000e+00 : f32
    %59 = vector.broadcast %cst_38 : f32 to vector<1x1x128xf32>
    %60 = vector.extract_strided_slice %58 {offsets = [0, 0, 0], sizes = [1, 7, 128], strides = [1, 1, 1]} : vector<1x8x128xf32> to vector<1x7x128xf32>
    %61 = tpu.concatenate %59, %60 in 1 : vector<1x1x128xf32>, vector<1x7x128xf32> -> vector<1x8x128xf32>
    %62 = arith.addf %58, %61 : vector<1x8x128xf32>
    %cst_39 = arith.constant 0.000000e+00 : f32
    %63 = vector.broadcast %cst_39 : f32 to vector<1x2x128xf32>
    %64 = vector.extract_strided_slice %62 {offsets = [0, 0, 0], sizes = [1, 6, 128], strides = [1, 1, 1]} : vector<1x8x128xf32> to vector<1x6x128xf32>
    %65 = tpu.concatenate %63, %64 in 1 : vector<1x2x128xf32>, vector<1x6x128xf32> -> vector<1x8x128xf32>
    %66 = arith.addf %62, %65 : vector<1x8x128xf32>
    %cst_40 = arith.constant 0.000000e+00 : f32
    %67 = vector.broadcast %cst_40 : f32 to vector<1x4x128xf32>
    %68 = vector.extract_strided_slice %66 {offsets = [0, 0, 0], sizes = [1, 4, 128], strides = [1, 1, 1]} : vector<1x8x128xf32> to vector<1x4x128xf32>
    %69 = tpu.concatenate %67, %68 in 1 : vector<1x4x128xf32>, vector<1x4x128xf32> -> vector<1x8x128xf32>
    %70 = arith.addf %66, %69 : vector<1x8x128xf32>
    %71 = vector.extract_strided_slice %70 {offsets = [0, 0, 0], sizes = [1, 8, 3], strides = [1, 1, 1]} : vector<1x8x128xf32> to vector<1x8x3xf32>
    %c0_41 = arith.constant 0 : index
    %c0_42 = arith.constant 0 : index
    %c0_43 = arith.constant 0 : index
    %72 = vector.load %arg2[%c0_41, %c0_42, %c0_43] : memref<1x1x3xf32, #tpu.memory_space<vmem>>, vector<1x1x3xf32>
    %73 = vector.broadcast %72 : vector<1x1x3xf32> to vector<1x8x3xf32>
    %74 = arith.addf %71, %73 : vector<1x8x3xf32>
    %c0_44 = arith.constant 0 : index
    %c0_45 = arith.constant 0 : index
    %c0_46 = arith.constant 0 : index
    %75 = vector.load %arg15[%c0_44, %c0_45, %c0_46] : memref<1x8x3xf32, #tpu.memory_space<vmem>>, vector<1x8x3xf32>
    tpu.vector_store %arg15[%c0_44, %c0_45, %c0_46], %74 {strides = array<i32>} : memref<1x8x3xf32, #tpu.memory_space<vmem>>, vector<1x8x3xf32>,
    return
  }
  func.func @transform_0(%arg0: i32) -> (i32, i32, i32) {
    %c0_i32 = arith.constant 0 : i32
    %c0_i32_0 = arith.constant 0 : i32
    %c0_i32_1 = arith.constant 0 : i32
    return %arg0, %c0_i32, %c0_i32_0 : i32, i32, i32
  }
  func.func @transform_1(%arg0: i32) -> (i32, i32, i32) {
    %c0_i32 = arith.constant 0 : i32
    %c0_i32_0 = arith.constant 0 : i32
    %c0_i32_1 = arith.constant 0 : i32
    return %arg0, %c0_i32, %c0_i32_0 : i32, i32, i32
  }
  func.func @transform_2(%arg0: i32) -> (i32, i32) {
    %c0_i32 = arith.constant 0 : i32
    %c0_i32_0 = arith.constant 0 : i32
    %c0_i32_1 = arith.constant 0 : i32
    return %c0_i32, %c0_i32_0 : i32, i32
  }
  func.func @transform_3(%arg0: i32) -> (i32, i32) {
    %c0_i32 = arith.constant 0 : i32
    %c0_i32_0 = arith.constant 0 : i32
    %c0_i32_1 = arith.constant 0 : i32
    return %c0_i32, %c0_i32_0 : i32, i32
  }
  func.func @transform_4(%arg0: i32) -> (i32, i32) {
    %c0_i32 = arith.constant 0 : i32
    %c0_i32_0 = arith.constant 0 : i32
    %c0_i32_1 = arith.constant 0 : i32
    return %c0_i32, %c0_i32_0 : i32, i32
  }
  func.func @transform_5(%arg0: i32) -> (i32, i32) {
    %c0_i32 = arith.constant 0 : i32
    %c0_i32_0 = arith.constant 0 : i32
    %c0_i32_1 = arith.constant 0 : i32
    return %c0_i32, %c0_i32_0 : i32, i32
  }
  func.func @transform_6(%arg0: i32) -> (i32, i32) {
    %c0_i32 = arith.constant 0 : i32
    %c0_i32_0 = arith.constant 0 : i32
    %c0_i32_1 = arith.constant 0 : i32
    return %c0_i32, %c0_i32_0 : i32, i32
  }
  func.func @transform_7(%arg0: i32) -> (i32, i32) {
    %c0_i32 = arith.constant 0 : i32
    %c0_i32_0 = arith.constant 0 : i32
    %c0_i32_1 = arith.constant 0 : i32
    return %c0_i32, %c0_i32_0 : i32, i32
  }
  func.func @transform_8(%arg0: i32) -> (i32, i32) {
    %c0_i32 = arith.constant 0 : i32
    %c0_i32_0 = arith.constant 0 : i32
    %c0_i32_1 = arith.constant 0 : i32
    return %c0_i32, %c0_i32_0 : i32, i32
  }
  func.func @transform_9(%arg0: i32) -> (i32, i32) {
    %c0_i32 = arith.constant 0 : i32
    %c0_i32_0 = arith.constant 0 : i32
    %c0_i32_1 = arith.constant 0 : i32
    return %c0_i32, %c0_i32_0 : i32, i32
  }
  func.func @transform_10(%arg0: i32) -> (i32, i32) {
    %c0_i32 = arith.constant 0 : i32
    %c0_i32_0 = arith.constant 0 : i32
    %c0_i32_1 = arith.constant 0 : i32
    return %c0_i32, %c0_i32_0 : i32, i32
  }
  func.func @transform_11(%arg0: i32) -> (i32, i32) {
    %c0_i32 = arith.constant 0 : i32
    %c0_i32_0 = arith.constant 0 : i32
    %c0_i32_1 = arith.constant 0 : i32
    return %c0_i32, %c0_i32_0 : i32, i32
  }
  func.func @transform_12(%arg0: i32) -> (i32, i32) {
    %c0_i32 = arith.constant 0 : i32
    %c0_i32_0 = arith.constant 0 : i32
    %c0_i32_1 = arith.constant 0 : i32
    return %c0_i32, %c0_i32_0 : i32, i32
  }
  func.func @transform_13(%arg0: i32) -> (i32, i32) {
    %c0_i32 = arith.constant 0 : i32
    %c0_i32_0 = arith.constant 0 : i32
    %c0_i32_1 = arith.constant 0 : i32
    return %c0_i32, %c0_i32_0 : i32, i32
  }
  func.func @transform_14(%arg0: i32) -> (i32, i32, i32) {
    %c0_i32 = arith.constant 0 : i32
    %c0_i32_0 = arith.constant 0 : i32
    %c0_i32_1 = arith.constant 0 : i32
    return %arg0, %c0_i32, %c0_i32_0 : i32, i32, i32
  }
}

</mosaic_0001>

<bundles_post_ra>
// kernel: tpu_custom_call.1
= control target key start
LH: loop header
LB: loop body
LE: loop exit
PB: predicated region body
PF: predicated region fallthrough
CT: control target
= control target key end

     0   :  { %s1819_s0 = inlined_call_operand.vmem [shape: f32[2,8,6], index: 0, kind: input, shape index: {}]   ;;  %s1820_s1 = inlined_call_operand.vmem [shape: f32[2,1,3], index: 1, kind: input, shape index: {}]   ;;  %s1821_s2 = inlined_call_operand.vmem [shape: bf16[6,128], index: 2, kind: input, shape index: {}]   ;;  %s1822_s3 = inlined_call_operand.vmem [shape: f32[1,128], index: 3, kind: input, shape index: {}]   ;;  %s1823_s4 = inlined_call_operand.hbm [shape: bf16[128,128], index: 4, kind: input, shape index: {}]   ;;  %s1824_s5 = inlined_call_operand.vmem [shape: f32[1,128], index: 5, kind: input, shape index: {}]   ;;  %s1825_s6 = inlined_call_operand.hbm [shape: bf16[128,128], index: 6, kind: input, shape index: {}]   ;;  %s1826_s7 = inlined_call_operand.vmem [shape: f32[1,128], index: 7, kind: input, shape index: {}]   ;;  %s1827_s8 = inlined_call_operand.hbm [shape: bf16[128,128], index: 8, kind: input, shape index: {}]   ;;  %s1828_s9 = inlined_call_operand.vmem [shape: f32[1,128], index: 9, kind: input, shape index: {}]   ;;  %s1829_s10 = inlined_call_operand.hbm [shape: bf16[128,128], index: 10, kind: input, shape index: {}]   ;;  %s1830_s11 = inlined_call_operand.vmem [shape: f32[1,128], index: 11, kind: input, shape index: {}]   ;;  %s1831_s12 = inlined_call_operand.hbm [shape: bf16[128,128], index: 12, kind: input, shape index: {}]   ;;  %s1832_s13 = inlined_call_operand.vmem [shape: f32[1,128], index: 13, kind: input, shape index: {}]   ;;  %s1833_s14 = inlined_call_operand.vmem [shape: f32[2,8,3], index: 14, kind: output, shape index: {}]  }
   0x1   :  { %1835 = sst [smem:[#allocation14_spill]] %s1823_s4 }
   0x2   :  { %1836 = sst [smem:[#allocation15_spill]] %s1825_s6 }
   0x3   :  { %1837 = sst [smem:[#allocation16_spill]] %s1829_s10 }
   0x4   :  { %19 = vsyncpa [#allocation3], 0 }
   0x5   :  { %20 = vsyncpa [#allocation5], 0 }
   0x6   :  { %21 = vsyncpa [#allocation8], 0  ;;  %s1709_s29 = smov 0  }
   0x7 LB: > { %1838 = sst [smem:[#allocation13_spill]] %s1625_s29  ;;  %s1715_s30 = sadd.s32 4294967295, %s1625_s29   ;;  %s1625_s29 = sphi %s1709_s29, %s27_s29  }
   0x8   : > { %p1166_p0 = scmp.ge.s32.totalorder %s1625_s29, 1  ;;  %p362_p1 = scmp.lt.s32.totalorder %s1625_s29, 3 }
   0x9   : > { %p1421_p2 = scmp.eq.s32.totalorder %s1715_s30, 0  ;;  %s1839_s6 = sld [smem:[#allocation15_spill]] }
   0xa   : > { %p1723_p3 = pnand %p1166_p0, %p362_p1  ;;  %s1841_s10 = sld [smem:[#allocation16_spill]] }
   0xb   : > { %s1627_s22 = smov [#allocation4]   ;;  %s1628_s25 = smov [#allocation7]  }
   0xc   : > { %p1405_p4 = pneg %p1723_p3  ;;  %s398_s23 = sshll.u32 %s1627_s22, 4  ;;  %s399_s23 = int_to_ptr.vmem [resolvable:$true] %s398_s23 }
   0xd   : > { %s432_s26 = sshll.u32 %s1628_s25, 4  ;;  %s1843_s4 = sld [smem:[#allocation14_spill]]  ;;  %s433_s26 = int_to_ptr.vmem [resolvable:$true] %s432_s26 }
   0xe   : > { %p1734_p5 = pnand %p1421_p2, %p1405_p4  ;;  %s1629_s16 = smov 64  }
   0xf   : > { %s396_s17 = sshll.u32 %s1839_s6, 4  ;;  %s1630_s19 = smov 4   ;;  %s397_s17 = int_to_ptr.hbm [resolvable:$true] %s396_s17 }
  0x10   : > { %s430_s21 = sshll.u32 %s1841_s10, 4  ;;  %s1631_s20 = smov [#allocation2]   ;;  %s431_s21 = int_to_ptr.hbm [resolvable:$true] %s430_s21 }
  0x11   : > { %1411 = dma.hbm_to_vmem [thread:$0]  (!%p1734_p5), %s397_s17, 1024, %s399_s23, [#allocation5], %s1629_s16, %s1629_s16, %s1630_s19  }
  0x12   : > { %1417 = dma.hbm_to_vmem [thread:$0]  (!%p1734_p5), %s431_s21, 1024, %s433_s26, [#allocation8], %s1629_s16, %s1629_s16, %s1630_s19  }
  0x13   : > { %s379_s15 = sshll.u32 %s1843_s4, 4  ;;  %s381_s22 = sshll.u32 %s1631_s20, 4  ;;  %s380_s15 = int_to_ptr.hbm [resolvable:$true] %s379_s15  ;;  %s382_s22 = int_to_ptr.vmem [resolvable:$true] %s381_s22 }
  0x14   : > { %s413_s25 = sshll.u32 %s1827_s8, 4  ;;  %s447_s4 = sshll.u32 %s1831_s12, 4  ;;  %s414_s25 = int_to_ptr.hbm [resolvable:$true] %s413_s25  ;;  %s448_s4 = int_to_ptr.hbm [resolvable:$true] %s447_s4 }
  0x15   : > { %1408 = dma.hbm_to_vmem [thread:$0]  (!%p1734_p5), %s380_s15, 1024, %s382_s22, [#allocation3], %s1629_s16, %s1629_s16, %s1630_s19  }
  0x16   : > { %s1632_s29 = smov [#allocation6]   ;;  %s1633_s21 = smov [#allocation9]  }
  0x17   : > { %s415_s17 = sshll.u32 %s1632_s29, 4  ;;  %s449_s23 = sshll.u32 %s1633_s21, 4  ;;  %s416_s17 = int_to_ptr.vmem [resolvable:$true] %s415_s17  ;;  %s450_s23 = int_to_ptr.vmem [resolvable:$true] %s449_s23 }
  0x18   : > { %1414 = dma.hbm_to_vmem [thread:$0]  (!%p1734_p5), %s414_s25, 1024, %s416_s17, [#allocation5], %s1629_s16, %s1629_s16, %s1630_s19  }
  0x19   : > { %1420 = dma.hbm_to_vmem [thread:$0]  (!%p1734_p5), %s448_s4, 1024, %s450_s23, [#allocation8], %s1629_s16, %s1629_s16, %s1630_s19  }
  0x1a   : > { %481 = sbr.rel (%p1723_p3) target bundleno = 889 (0x379), region = 76 }
  0x1f   : > { %1612 = dma.done.wait (%p1421_p2), [#allocation3], 1024  }
  0x20   : > { %1614 = vsyncadd (%p1421_p2), [#allocation3], 4294966272 }
  0x21   : > { %1616 = dma.done.wait (%p1421_p2), [#allocation5], 2048  }
  0x22   : > { %1618 = vsyncadd (%p1421_p2), [#allocation5], 4294965248 }
  0x23   : > { %1620 = dma.done.wait (%p1421_p2), [#allocation8], 2048  }
  0x24   : > { %1622 = vsyncadd (%p1421_p2), [#allocation8], 4294965248  ;;  %p549_p6 = scmp.lt.s32.totalorder %s1715_s30, 1  ;;  %vm572_vm0 = vcmask 1042432   ;;  %v563_v0 = vld [vmem:[%s1821_s2] sm:$0x7] }
  0x25   : > { %v1352_v2 = vld [vmem:[#allocation2 + $0x38] sm:$0xff]  ;;  %v574_v3 = vsel %vm572_vm0, %v563_v0, 0  ;;  %vm568_vm1 = vcmask 48128   ;;  %v1351_v5 = vld [vmem:[#allocation2 + $0x30] sm:$0xff]  ;;  %v1350_v6 = vld [vmem:[#allocation2 + $0x28] sm:$0xff]  ;;  %vm1030_vm9 = vcmask 1040384  }
  0x26   : > { %s1846_s30 = smov (!%p549_p6, %s1715_s30), 1  ;;  %583 = vmatpush.bf16.msra.mxu0 %v574_v3  ;;  %661 = vmatpush.bf16.msra.mxu1 %v1352_v2  ;;  %v1349_v7 = vld [vmem:[#allocation2 + $0x20] sm:$0xff]  ;;  %v1348_v8 = vld [vmem:[#allocation2 + $0x18] sm:$0xff]  ;;  %v1347_v9 = vld [vmem:[#allocation2 + $0x10] sm:$0xff]  ;;  %vm1036_vm10 = vcmask 1041408   ;;  %vm1042_vm11 = vcmask 1043456  }
  0x27   : > { %s1179_s4 = sshll.u32 %s1846_s30, 3  ;;  %s555_s16 = scalar_lea.vmem %s1820_s1, %s1846_s30  ;;  %v1346_v10 = vld [vmem:[#allocation2 + $0x8] sm:$0xff]  ;;  %v1345_v11 = vld [vmem:[#allocation2] sm:$0xff]  ;;  %v1360_v19 = vld [vmem:[#allocation4 + $0x38] sm:$0xff]  ;;  %vm1050_vm12 = vcmask 23552  }
  0x28   : > { %s552_s29 = scalar_lea.vmem %s1819_s0, %s1179_s4  ;;  %v1446_v12 = vld [vmem:[%s1822_s3] ss:$0 sm:$0xff]  ;;  %762 = vmatpush.bf16.msra.mxu2 %v1360_v19  ;;  %v1359_v20 = vld [vmem:[#allocation4 + $0x30] sm:$0xff]  ;;  %v1358_v21 = vld [vmem:[#allocation4 + $0x28] sm:$0xff]  ;;  %s559_s19 = scalar_lea.vmem %s1833_s14, %s1179_s4 }
  0x29   : > { %v561_v1 = vld [vmem:[%s552_s29] sm:$0xff]  ;;  %v1356_v23 = vld [vmem:[#allocation4 + $0x18] sm:$0xff]  ;;  %v1355_v24 = vld [vmem:[#allocation4 + $0x10] sm:$0xff] }
  0x2a   : > { %v562_v4 = vpack.c.bf16 %v561_v1, %v561_v1  ;;  %662 = vmatpush.bf16.msra.mxu1 %v1351_v5  ;;  %v1357_v22 = vld [vmem:[#allocation4 + $0x20] sm:$0xff]  ;;  %v1354_v25 = vld [vmem:[#allocation4 + $0x8] sm:$0xff]  ;;  %v1368_v30 = vld [vmem:[#allocation6 + $0x38] sm:$0xff] }
  0x2b   : > { %v1353_v26 = vld [vmem:[#allocation4] sm:$0xff]  ;;  %847 = vmatpush.bf16.msra.mxu3 %v1368_v30  ;;  %v1367_v32 = vld [vmem:[#allocation6 + $0x30] sm:$0xff]  ;;  %v1366_v33 = vld [vmem:[#allocation6 + $0x28] sm:$0xff] }
  0x2c   : > { %1181 = vmatmul.msk.bf16.vlgmr.msra.gmra.mxu0 %vm568_vm1, %v562_v4  ;;  %763 = vmatpush.bf16.msra.mxu2 %v1359_v20  ;;  %v1447_v27 = vld [vmem:[%s1824_s5] ss:$0 sm:$0xff]  ;;  %v1364_v38 = vld [vmem:[#allocation6 + $0x18] sm:$0xff]  ;;  %v1363_v39 = vld [vmem:[#allocation6 + $0x10] sm:$0xff] }
  0x2d   : > { %v1365_v36 = vld [vmem:[#allocation6 + $0x20] sm:$0xff]  ;;  %v1362_v51 = vld [vmem:[#allocation6 + $0x8] sm:$0xff]  ;;  %v1376_v53 = vld [vmem:[#allocation7 + $0x38] sm:$0xff] }
  0x2e   : > { %663 = vmatpush.bf16.msra.mxu1 %v1350_v6  ;;  %v1361_v52 = vld [vmem:[#allocation6] sm:$0xff]  ;;  %929 = vmatpush.bf16.msrb.mxu0 %v1376_v53  ;;  %v1375_v54 = vld [vmem:[#allocation7 + $0x30] sm:$0xff]  ;;  %v1374_v55 = vld [vmem:[#allocation7 + $0x28] sm:$0xff] }
  0x2f   : > { %848 = vmatpush.bf16.msra.mxu3 %v1367_v32  ;;  %v1373_v56 = vld [vmem:[#allocation7 + $0x20] sm:$0xff]  ;;  %v1372_v57 = vld [vmem:[#allocation7 + $0x18] sm:$0xff]  ;;  %v1371_v58 = vld [vmem:[#allocation7 + $0x10] sm:$0xff] }
  0x30   : > { %764 = vmatpush.bf16.msra.mxu2 %v1358_v21  ;;  %v1448_v59 = vld [vmem:[%s1826_s7] ss:$0 sm:$0xff]  ;;  %v1370_v60 = vld [vmem:[#allocation7 + $0x8] sm:$0xff]  ;;  %v1384_v4 = vld [vmem:[#allocation9 + $0x38] sm:$0xff] }
  0x31   : > { %v1369_v3 = vld [vmem:[#allocation7] sm:$0xff]  ;;  %v1383_v5 = vld [vmem:[#allocation9 + $0x30] sm:$0xff]  ;;  %v1382_v6 = vld [vmem:[#allocation9 + $0x28] sm:$0xff] }
  0x32   : > { %664 = vmatpush.bf16.msra.mxu1 %v1349_v7  ;;  %930 = vmatpush.bf16.msrb.mxu0 %v1375_v54  ;;  %v1381_v7 = vld [vmem:[#allocation9 + $0x20] sm:$0xff] }
  0x33   : > { %849 = vmatpush.bf16.msra.mxu3 %v1366_v33 }
  0x34   : > { %765 = vmatpush.bf16.msra.mxu2 %v1357_v22 }
  0x36   : > { %665 = vmatpush.bf16.msra.mxu1 %v1348_v8  ;;  %931 = vmatpush.bf16.msrb.mxu0 %v1374_v55  ;;  %v1380_v8 = vld [vmem:[#allocation9 + $0x18] sm:$0xff] }
  0x37   : > { %850 = vmatpush.bf16.msra.mxu3 %v1365_v36 }
  0x38   : > { %766 = vmatpush.bf16.msra.mxu2 %v1356_v23 }
  0x3a   : > { %666 = vmatpush.bf16.msra.mxu1 %v1347_v9  ;;  %932 = vmatpush.bf16.msrb.mxu0 %v1373_v56  ;;  %v1379_v9 = vld [vmem:[#allocation9 + $0x10] sm:$0xff] }
  0x3b   : > { %851 = vmatpush.bf16.msra.mxu3 %v1364_v38 }
  0x3c   : > { %767 = vmatpush.bf16.msra.mxu2 %v1355_v24  ;;  %v1451_v24 = vld [vmem:[%s1832_s13] ss:$0 sm:$0xff] }
  0x3e   : > { %667 = vmatpush.bf16.msra.mxu1 %v1346_v10  ;;  %933 = vmatpush.bf16.msrb.mxu0 %v1372_v57  ;;  %v1449_v10 = vld [vmem:[%s1828_s9] ss:$0 sm:$0xff] }
  0x3f   : > { %852 = vmatpush.bf16.msra.mxu3 %v1363_v39 }
  0x40   : > { %768 = vmatpush.bf16.msra.mxu2 %v1354_v25 }
  0x42   : > { %668 = vmatpush.bf16.msra.mxu1 %v1345_v11  ;;  %934 = vmatpush.bf16.msrb.mxu0 %v1371_v58 }
  0x43   : > { %853 = vmatpush.bf16.msra.mxu3 %v1362_v51 }
  0x44   : > { %769 = vmatpush.bf16.msra.mxu2 %v1353_v26 }
  0x46   : > { %935 = vmatpush.bf16.msrb.mxu0 %v1370_v60  ;;  %1014 = vmatpush.bf16.msrb.mxu1 %v1384_v4 }
  0x47   : > { %854 = vmatpush.bf16.msra.mxu3 %v1361_v52 }
  0x4a   : > { %936 = vmatpush.bf16.msrb.mxu0 %v1369_v3  ;;  %1015 = vmatpush.bf16.msrb.mxu1 %v1383_v5 }
  0x4e   : > { %1016 = vmatpush.bf16.msrb.mxu1 %v1382_v6 }
  0x52   : > { %1017 = vmatpush.bf16.msrb.mxu1 %v1381_v7 }
  0x56   : > { %1018 = vmatpush.bf16.msrb.mxu1 %v1380_v8 }
  0x5a   : > { %1019 = vmatpush.bf16.msrb.mxu1 %v1379_v9 }
  0xa9   : > { %v585_v13 = vpop.f32.mrf.mxu0 }
  0xaa   : > { %v586_v14 = vadd.f32 %v1446_v12, %v585_v13 }
  0xac   : > { %v590_v15 = vmul.f32 0.01, %v586_v14  ;;  %vm589_vm2 = vcmp.ge.f32.partialorder %v586_v14, 0.0 }
  0xae   : > { %v591_v16 = vsel %vm589_vm2, %v586_v14, %v590_v15  ;;  %v1378_v15 = vld [vmem:[#allocation9 + $0x8] sm:$0xff] }
  0xaf   : > { %v592_v17 = vpack.c.bf16 %v591_v16, %v591_v16  ;;  %1020 = vmatpush.bf16.msrb.mxu1 %v1378_v15  ;;  %v1377_v16 = vld [vmem:[#allocation9] sm:$0xff] }
  0xb1   : > { %v587_v18 = vpop.f32.mrf.mxu0  ;;  %669 = vmatmul.bf16.vlgmr.msra.gmra.mxu1 %v592_v17  ;;  %v1450_v17 = vld [vmem:[%s1830_s11] ss:$0 sm:$0xff] }
  0xb3   : > { %1021 = vmatpush.bf16.msrb.mxu1 %v1377_v16 }
 0x12e   : > { %v670_v28 = vpop.f32.mrf.mxu1 }
 0x12f   : > { %v671_v29 = vadd.f32 %v1447_v27, %v670_v28 }
 0x131   : > { %v1214_v31 = vmul.f32 -1.442695, %v671_v29 }
 0x133   : > { %1453 = vpow2.f32 %v1214_v31 }
 0x136   : > { %v672_v34 = vpop.f32.mrf.mxu1 }
 0x139   : > { %v1454_v35 = vpop.eup %1453 }
 0x13a   : > { %v677_v37 = vadd.f32 1.0, %v1454_v35  ;;  %v1452_v35 = vld [vmem:[%s555_s16] ss:$0 sm:$0xff] }
 0x13c   : > { %1455 = vrcp.f32 %v677_v37  ;;  %v689_v43 = vand.u32 2147483648, %v677_v37  ;;  %v687_v45 = vand.u32 2147483647, %v677_v37  ;;  %vm683_vm4 = vweird.f32 %v677_v37 }
 0x13e   : > { %v690_v47 = vor.u32 1.1754944e-38, %v689_v43  ;;  %vm688_vm6 = vcmp.eq.f32.partialorder %v687_v45, 8.507059e+37 }
 0x142   : > { %v1456_v40 = vpop.eup %1455 }
 0x143   : > { %v679_v41 = vmul.f32 %v1456_v40, %v677_v37  ;;  %vm684_vm3 = vweird.f32 %v1456_v40 }
 0x144   : > { %vm685_vm5 = vmor %vm683_vm4, %vm684_vm3 }
 0x145   : > { %v680_v42 = vsub.f32 1.0, %v679_v41 }
 0x147   : > { %v681_v44 = vmul.f32 %v1456_v40, %v680_v42 }
 0x149   : > { %v682_v46 = vadd.f32 %v1456_v40, %v681_v44 }
 0x14b   : > { %v686_v48 = vsel %vm685_vm5, %v1456_v40, %v682_v46 }
 0x14c   : > { %v691_v49 = vsel %vm688_vm6, %v690_v47, %v686_v48 }
 0x14d   : > { %v693_v50 = vpack.c.bf16 %v691_v49, %v691_v49 }
 0x14f   : > { %770 = vmatmul.bf16.vlgmr.msra.gmra.mxu2 %v693_v50 }
 0x1d2   : > { %v771_v61 = vpop.f32.mrf.mxu2 }
 0x1d3   : > { %v772_v62 = vadd.f32 %v1448_v59, %v771_v61 }
 0x1d5   : > { %v776_v63 = vmul.f32 0.01, %v772_v62  ;;  %vm775_vm7 = vcmp.ge.f32.partialorder %v772_v62, 0.0 }
 0x1d7   : > { %v777_v0 = vsel %vm775_vm7, %v772_v62, %v776_v63 }
 0x1d8   : > { %v778_v1 = vpack.c.bf16 %v777_v0, %v777_v0 }
 0x1da   : > { %v773_v2 = vpop.f32.mrf.mxu2  ;;  %855 = vmatmul.bf16.vlgmr.msra.gmra.mxu3 %v778_v1 }
 0x25d   : > { %v856_v11 = vpop.f32.mrf.mxu3 }
 0x25e   : > { %v857_v12 = vadd.f32 %v1449_v10, %v856_v11 }
 0x260   : > { %v860_v13 = vpack.c.bf16 %v857_v12, %v857_v12 }
 0x262   : > { %937 = vmatmul.bf16.vlgmr.msrb.gmra.mxu0 %v860_v13 }
 0x265   : > { %v858_v14 = vpop.f32.mrf.mxu3 }
 0x2df   : > { %v938_v18 = vpop.f32.mrf.mxu0 }
 0x2e0   : > { %v939_v19 = vadd.f32 %v1450_v17, %v938_v18 }
 0x2e2   : > { %vm942_vm8 = vcmp.ge.f32.partialorder %v939_v19, 0.0  ;;  %v943_v20 = vmul.f32 0.01, %v939_v19 }
 0x2e4   : > { %v944_v21 = vsel %vm942_vm8, %v939_v19, %v943_v20 }
 0x2e5   : > { %v945_v22 = vpack.c.bf16 %v944_v21, %v944_v21 }
 0x2e7   : > { %v940_v23 = vpop.f32.mrf.mxu0  ;;  %1022 = vmatmul.bf16.vlgmr.msrb.gmra.mxu1 %v945_v22 }
 0x364   : > { %v1023_v25 = vpop.f32.mrf.mxu1 }
 0x365   : > { %v1024_v26 = vadd.f32 %v1451_v24, %v1023_v25 }
 0x367   : > { %v1028_v27 = vrot.slane %v1024_v26, 7 }
 0x369   : > { %v1031_v28 = vsel %vm1030_vm9, 0.0, %v1028_v27 }
 0x36a   : > { %v1032_v29 = vadd.f32 %v1031_v28, %v1024_v26 }
 0x36c   : > { %v1034_v30 = vrot.slane %v1032_v29, 6  ;;  %v1025_v31 = vpop.f32.mrf.mxu1 }
 0x36e   : > { %v1037_v32 = vsel %vm1036_vm10, 0.0, %v1034_v30 }
 0x36f   : > { %v1038_v33 = vadd.f32 %v1037_v32, %v1032_v29 }
 0x371   : > { %v1040_v34 = vrot.slane %v1038_v33, 4 }
 0x373   : > { %v1043_v36 = vsel %vm1042_vm11, 0.0, %v1040_v34 }
 0x374   : > { %v1044_v37 = vadd.f32 %v1043_v36, %v1038_v33 }
 0x376   : > { %v1049_v38 = vadd.f32 %v1452_v35, %v1044_v37 }
 0x378   : > { %1051 = vst.msk [vmem:[%s559_s19] sm:$0xff] %vm1050_vm12, %v1049_v38 }
 0x379 PF: > { %s1844_s20 = sld [smem:[#allocation13_spill]] }
 0x37f   : > { %s27_s29 = sadd.s32 1, %s1844_s20  }
 0x380   : > { %p24_p7 = scmp.ge.s32.totalorder %s27_s29, 4  }
 0x382   :  { %26 = sbr.rel (!%p24_p7) target bundleno = 7 (0x7), region = 130 }
 0x387   :  { %1071 = vsyncpa [#allocation3], 1 }
 0x388   :  { %1073 = vsyncpa [#allocation3 + $0x1], 1 }
 0x389   :  { %1074 = vsyncpa [#allocation5], 1 }
 0x38a   :  { %1075 = vsyncpa [#allocation8], 1 }

</bundles_post_ra>
